<compile_context>
chip_gen: v7x
topology: tpu7x:2x2x1
jax: 0.10.0
libtpu: 0.0.40
codegen_flags: <defaults>
</compile_context>

<pallas_src>
import jax
import jax.numpy as jnp
from jax.experimental import pallas as pl
from jax.experimental.pallas import tpu as pltpu

EPS = 1e-5


def _bn_relu(h, gamma, beta):
    """Training-mode BatchNorm1d (+ReLU) with one-pass stats and folded scale/shift.

    h: [B, D] float32.  gamma/beta: [1, D] float32.
    """
    inv_b = 1.0 / h.shape[0]
    mean = jnp.sum(h, axis=0, keepdims=True) * inv_b
    msq = jnp.sum(h * h, axis=0, keepdims=True) * inv_b
    var = jnp.maximum(msq - mean * mean, 0.0)          # biased variance, clamp fp cancellation
    scale = gamma * jax.lax.rsqrt(var + EPS)           # fold gamma into the normalization
    shift = beta - mean * scale
    return jnp.maximum(h * scale + shift, 0.0)


def _stable_sigmoid(h):
    # sigmoid(h) = 1/(1+e^-h) for h>=0, e^h/(1+e^h) for h<0 — no inf intermediate,
    # single EUP exp.
    e = jnp.exp(-jnp.abs(h))
    return jnp.where(h >= 0, 1.0, e) / (1.0 + e)


def snp_decoder_kernel(x_ref,
                       w1_ref, g1_ref, be1_ref,
                       w2_ref, g2_ref, be2_ref,
                       w3_ref, b3_ref,
                       out_ref):
    # Layer 1: Linear (bias dropped — cancelled by BN) -> BN -> ReLU
    h = jnp.dot(x_ref[...], w1_ref[...], preferred_element_type=jnp.float32)
    h = _bn_relu(h, g1_ref[...], be1_ref[...])

    # Layer 2: Linear (bias dropped) -> BN -> ReLU
    h = jnp.dot(h.astype(jnp.bfloat16), w2_ref[...], preferred_element_type=jnp.float32)
    h = _bn_relu(h, g2_ref[...], be2_ref[...])

    # Output layer: Linear -> Sigmoid
    h = jnp.dot(h.astype(jnp.bfloat16), w3_ref[...], preferred_element_type=jnp.float32)
    h = h + b3_ref[...]
    out_ref[...] = _stable_sigmoid(h).astype(out_ref.dtype)


def snp_decoder(x, params):
    """x: [B, H0] float32. params: dict of weights (see init_params)."""
    B = x.shape[0]
    d_out = params["w3"].shape[1]
    vmem = pl.BlockSpec(memory_space=pltpu.MemorySpace.VMEM)
    # bf16 weights into the MXU (f32 accumulation); BN params / output bias stay f32.
    args = (x.astype(jnp.bfloat16),
            params["w1"].astype(jnp.bfloat16), params["g1"], params["be1"],
            params["w2"].astype(jnp.bfloat16), params["g2"], params["be2"],
            params["w3"].astype(jnp.bfloat16), params["b3"])
    return pl.pallas_call(
        snp_decoder_kernel,
        out_shape=jax.ShapeDtypeStruct((B, d_out), jnp.float32),
        in_specs=[vmem] * len(args),
        out_specs=vmem,
    )(*args)


def init_params(key, hidden_dims, output_dim):
    """Deterministic synthetic parameter init (same shapes as the PyTorch module)."""
    h0, h1, h2 = hidden_dims
    ks = jax.random.split(key, 6)

    def lin(kw, kb, d_in, d_out):
        scale = 1.0 / jnp.sqrt(jnp.float32(d_in))
        w = jax.random.uniform(kw, (d_in, d_out), jnp.float32, -scale, scale)
        b = jax.random.uniform(kb, (1, d_out), jnp.float32, -scale, scale)
        return w, b

    w1, b1 = lin(ks[0], ks[1], h0, h1)
    w2, b2 = lin(ks[2], ks[3], h1, h2)
    w3, b3 = lin(ks[4], ks[5], h2, output_dim)
    return dict(
        w1=w1, b1=b1, g1=jnp.ones((1, h1), jnp.float32), be1=jnp.zeros((1, h1), jnp.float32),
        w2=w2, b2=b2, g2=jnp.ones((1, h2), jnp.float32), be2=jnp.zeros((1, h2), jnp.float32),
        w3=w3, b3=b3,
    )


def snp_decoder_reference(x, p, matmul_dtype=jnp.float32):
    """Pure-JAX reference mirroring the PyTorch forward (training-mode BN).

    Biases b1/b2 ARE applied here (as in PyTorch) — the kernel drops them because BN
    cancels them. matmul_dtype=bfloat16 mirrors the kernel's MXU input precision.
    """
    def lin(a, w, b):
        out = jnp.dot(a.astype(matmul_dtype), w.astype(matmul_dtype),
                      preferred_element_type=jnp.float32)
        return out + b

    def bn_relu(h, g, be):
        m = jnp.mean(h, axis=0, keepdims=True)
        v = jnp.mean((h - m) ** 2, axis=0, keepdims=True)
        return jnp.maximum((h - m) / jnp.sqrt(v + EPS) * g + be, 0.0)

    h = bn_relu(lin(x, p["w1"], p["b1"]), p["g1"], p["be1"])
    h = bn_relu(lin(h, p["w2"], p["b2"]), p["g2"], p["be2"])
    return jax.nn.sigmoid(lin(h, p["w3"], p["b3"]))


if __name__ == "__main__":
    # Small shapes consistent with the module: batch=8, hidden_dims=[32,64,128], output_dim=256
    hidden_dims = [32, 64, 128]
    output_dim = 256
    batch = 8

    key = jax.random.PRNGKey(0)
    kx, kp = jax.random.split(key)
    x = jax.random.normal(kx, (batch, hidden_dims[0]), jnp.float32)
    params = init_params(kp, hidden_dims, output_dim)

    out = jax.block_until_ready(snp_decoder(x, params))
    assert out.shape == (batch, output_dim)

    # Tight check against a reference that mirrors the kernel's bf16 matmul precision
    # (validates bias cancellation, one-pass BN stats, stable sigmoid).
    ref_bf16 = snp_decoder_reference(x, params, matmul_dtype=jnp.bfloat16)
    err_bf16 = float(jnp.max(jnp.abs(out - ref_bf16)))
    assert err_bf16 < 1e-3, f"mismatch vs bf16-precision reference: {err_bf16}"

    # Loose sanity check against full-f32 PyTorch-equivalent math (bf16 quantization noise only).
    ref_f32 = snp_decoder_reference(x, params, matmul_dtype=jnp.float32)
    err_f32 = float(jnp.max(jnp.abs(out - ref_f32)))
    assert err_f32 < 3e-2, f"mismatch vs f32 reference: {err_f32}"

    print("KERNEL_OK")
</pallas_src>

<mosaic_0001>
module attributes {stable_mosaic.version = 11 : i64} {
  func.func @snp_decoder_kernel(%arg0: memref<8x32xbf16, #tpu.memory_space<vmem>>, %arg1: memref<32x64xbf16, #tpu.memory_space<vmem>>, %arg2: memref<1x64xf32, #tpu.memory_space<vmem>>, %arg3: memref<1x64xf32, #tpu.memory_space<vmem>>, %arg4: memref<64x128xbf16, #tpu.memory_space<vmem>>, %arg5: memref<1x128xf32, #tpu.memory_space<vmem>>, %arg6: memref<1x128xf32, #tpu.memory_space<vmem>>, %arg7: memref<128x256xbf16, #tpu.memory_space<vmem>>, %arg8: memref<1x256xf32, #tpu.memory_space<vmem>>, %arg9: memref<8x256xf32, #tpu.memory_space<vmem>>) attributes {dimension_semantics = [], scalar_prefetch = 0 : i64, scratch_operands = 0 : i64, tpu.core_type = #tpu.core_type<tc>} {
    %c0 = arith.constant 0 : index
    %c0_0 = arith.constant 0 : index
    %0 = vector.load %arg0[%c0, %c0_0] : memref<8x32xbf16, #tpu.memory_space<vmem>>, vector<8x32xbf16>
    %c0_1 = arith.constant 0 : index
    %c0_2 = arith.constant 0 : index
    %1 = vector.load %arg1[%c0_1, %c0_2] : memref<32x64xbf16, #tpu.memory_space<vmem>>, vector<32x64xbf16>
    %cst = arith.constant dense<0.000000e+00> : vector<8x64xf32>
    %2 = tpu.matmul %0, %1, %cst {dimension_numbers = #tpu.dot_dimension_numbers<[1], [0], [0], [1], [0, 0, 1, 1], [], []>} : vector<8x32xbf16>, vector<32x64xbf16>, vector<8x64xf32> -> vector<8x64xf32>
    %c0_3 = arith.constant 0 : index
    %c0_4 = arith.constant 0 : index
    %3 = vector.load %arg2[%c0_3, %c0_4] : memref<1x64xf32, #tpu.memory_space<vmem>>, vector<1x64xf32>
    %c0_5 = arith.constant 0 : index
    %c0_6 = arith.constant 0 : index
    %4 = vector.load %arg3[%c0_5, %c0_6] : memref<1x64xf32, #tpu.memory_space<vmem>>, vector<1x64xf32>
    %cst_7 = arith.constant dense<0.000000e+00> : vector<64xf32>
    %5 = vector.multi_reduction <add>, %2, %cst_7 [0] : vector<8x64xf32> to vector<64xf32>
    %6 = vector.shape_cast %5 : vector<64xf32> to vector<1x64xf32>
    %cst_8 = arith.constant 1.250000e-01 : f32
    %7 = vector.broadcast %cst_8 : f32 to vector<1x64xf32>
    %8 = arith.mulf %6, %7 : vector<1x64xf32>
    %9 = arith.mulf %2, %2 : vector<8x64xf32>
    %cst_9 = arith.constant dense<0.000000e+00> : vector<64xf32>
    %10 = vector.multi_reduction <add>, %9, %cst_9 [0] : vector<8x64xf32> to vector<64xf32>
    %11 = vector.shape_cast %10 : vector<64xf32> to vector<1x64xf32>
    %cst_10 = arith.constant 1.250000e-01 : f32
    %12 = vector.broadcast %cst_10 : f32 to vector<1x64xf32>
    %13 = arith.mulf %11, %12 : vector<1x64xf32>
    %14 = arith.mulf %8, %8 : vector<1x64xf32>
    %15 = arith.subf %13, %14 : vector<1x64xf32>
    %cst_11 = arith.constant 0.000000e+00 : f32
    %16 = vector.broadcast %cst_11 : f32 to vector<1x64xf32>
    %17 = arith.maximumf %15, %16 : vector<1x64xf32>
    %cst_12 = arith.constant 9.99999974E-6 : f32
    %18 = vector.broadcast %cst_12 : f32 to vector<1x64xf32>
    %19 = arith.addf %17, %18 : vector<1x64xf32>
    %20 = math.rsqrt %19 : vector<1x64xf32>
    %21 = arith.mulf %3, %20 : vector<1x64xf32>
    %22 = arith.mulf %8, %21 : vector<1x64xf32>
    %23 = arith.subf %4, %22 : vector<1x64xf32>
    %24 = vector.broadcast %21 : vector<1x64xf32> to vector<8x64xf32>
    %25 = arith.mulf %2, %24 : vector<8x64xf32>
    %26 = vector.broadcast %23 : vector<1x64xf32> to vector<8x64xf32>
    %27 = arith.addf %25, %26 : vector<8x64xf32>
    %cst_13 = arith.constant 0.000000e+00 : f32
    %28 = vector.broadcast %cst_13 : f32 to vector<8x64xf32>
    %29 = arith.maximumf %27, %28 : vector<8x64xf32>
    %30 = arith.truncf %29 : vector<8x64xf32> to vector<8x64xbf16>
    %c0_14 = arith.constant 0 : index
    %c0_15 = arith.constant 0 : index
    %31 = vector.load %arg4[%c0_14, %c0_15] : memref<64x128xbf16, #tpu.memory_space<vmem>>, vector<64x128xbf16>
    %cst_16 = arith.constant dense<0.000000e+00> : vector<8x128xf32>
    %32 = tpu.matmul %30, %31, %cst_16 {dimension_numbers = #tpu.dot_dimension_numbers<[1], [0], [0], [1], [0, 0, 1, 1], [], []>} : vector<8x64xbf16>, vector<64x128xbf16>, vector<8x128xf32> -> vector<8x128xf32>
    %c0_17 = arith.constant 0 : index
    %c0_18 = arith.constant 0 : index
    %33 = vector.load %arg5[%c0_17, %c0_18] : memref<1x128xf32, #tpu.memory_space<vmem>>, vector<1x128xf32>
    %c0_19 = arith.constant 0 : index
    %c0_20 = arith.constant 0 : index
    %34 = vector.load %arg6[%c0_19, %c0_20] : memref<1x128xf32, #tpu.memory_space<vmem>>, vector<1x128xf32>
    %cst_21 = arith.constant dense<0.000000e+00> : vector<128xf32>
    %35 = vector.multi_reduction <add>, %32, %cst_21 [0] : vector<8x128xf32> to vector<128xf32>
    %36 = vector.shape_cast %35 : vector<128xf32> to vector<1x128xf32>
    %cst_22 = arith.constant 1.250000e-01 : f32
    %37 = vector.broadcast %cst_22 : f32 to vector<1x128xf32>
    %38 = arith.mulf %36, %37 : vector<1x128xf32>
    %39 = arith.mulf %32, %32 : vector<8x128xf32>
    %cst_23 = arith.constant dense<0.000000e+00> : vector<128xf32>
    %40 = vector.multi_reduction <add>, %39, %cst_23 [0] : vector<8x128xf32> to vector<128xf32>
    %41 = vector.shape_cast %40 : vector<128xf32> to vector<1x128xf32>
    %cst_24 = arith.constant 1.250000e-01 : f32
    %42 = vector.broadcast %cst_24 : f32 to vector<1x128xf32>
    %43 = arith.mulf %41, %42 : vector<1x128xf32>
    %44 = arith.mulf %38, %38 : vector<1x128xf32>
    %45 = arith.subf %43, %44 : vector<1x128xf32>
    %cst_25 = arith.constant 0.000000e+00 : f32
    %46 = vector.broadcast %cst_25 : f32 to vector<1x128xf32>
    %47 = arith.maximumf %45, %46 : vector<1x128xf32>
    %cst_26 = arith.constant 9.99999974E-6 : f32
    %48 = vector.broadcast %cst_26 : f32 to vector<1x128xf32>
    %49 = arith.addf %47, %48 : vector<1x128xf32>
    %50 = math.rsqrt %49 : vector<1x128xf32>
    %51 = arith.mulf %33, %50 : vector<1x128xf32>
    %52 = arith.mulf %38, %51 : vector<1x128xf32>
    %53 = arith.subf %34, %52 : vector<1x128xf32>
    %54 = vector.broadcast %51 : vector<1x128xf32> to vector<8x128xf32>
    %55 = arith.mulf %32, %54 : vector<8x128xf32>
    %56 = vector.broadcast %53 : vector<1x128xf32> to vector<8x128xf32>
    %57 = arith.addf %55, %56 : vector<8x128xf32>
    %cst_27 = arith.constant 0.000000e+00 : f32
    %58 = vector.broadcast %cst_27 : f32 to vector<8x128xf32>
    %59 = arith.maximumf %57, %58 : vector<8x128xf32>
    %60 = arith.truncf %59 : vector<8x128xf32> to vector<8x128xbf16>
    %c0_28 = arith.constant 0 : index
    %c0_29 = arith.constant 0 : index
    %61 = vector.load %arg7[%c0_28, %c0_29] : memref<128x256xbf16, #tpu.memory_space<vmem>>, vector<128x256xbf16>
    %cst_30 = arith.constant dense<0.000000e+00> : vector<8x256xf32>
    %62 = tpu.matmul %60, %61, %cst_30 {dimension_numbers = #tpu.dot_dimension_numbers<[1], [0], [0], [1], [0, 0, 1, 1], [], []>} : vector<8x128xbf16>, vector<128x256xbf16>, vector<8x256xf32> -> vector<8x256xf32>
    %c0_31 = arith.constant 0 : index
    %c0_32 = arith.constant 0 : index
    %63 = vector.load %arg8[%c0_31, %c0_32] : memref<1x256xf32, #tpu.memory_space<vmem>>, vector<1x256xf32>
    %64 = vector.broadcast %63 : vector<1x256xf32> to vector<8x256xf32>
    %65 = arith.addf %62, %64 : vector<8x256xf32>
    %66 = math.absf %65 : vector<8x256xf32>
    %cst_33 = arith.constant 0.000000e+00 : f32
    %67 = vector.broadcast %cst_33 : f32 to vector<8x256xf32>
    %68 = arith.subf %67, %66 : vector<8x256xf32>
    %69 = math.exp %68 : vector<8x256xf32>
    %cst_34 = arith.constant 0.000000e+00 : f32
    %70 = vector.broadcast %cst_34 : f32 to vector<8x256xf32>
    %71 = arith.cmpf oge, %65, %70 : vector<8x256xf32>
    %cst_35 = arith.constant 1.000000e+00 : f32
    %72 = vector.broadcast %cst_35 : f32 to vector<8x256xf32>
    %73 = arith.select %71, %72, %69 : vector<8x256xi1>, vector<8x256xf32>
    %cst_36 = arith.constant 1.000000e+00 : f32
    %74 = vector.broadcast %cst_36 : f32 to vector<8x256xf32>
    %75 = arith.addf %74, %69 : vector<8x256xf32>
    %76 = arith.divf %73, %75 : vector<8x256xf32>
    %c0_37 = arith.constant 0 : index
    %c0_38 = arith.constant 0 : index
    %77 = vector.load %arg9[%c0_37, %c0_38] : memref<8x256xf32, #tpu.memory_space<vmem>>, vector<8x256xf32>
    tpu.vector_store %arg9[%c0_37, %c0_38], %76 {strides = array<i32>} : memref<8x256xf32, #tpu.memory_space<vmem>>, vector<8x256xf32>,
    return
  }
}

</mosaic_0001>

<bundles_post_ra>
// kernel: tpu_custom_call.1
= control target key start
LH: loop header
LB: loop body
LE: loop exit
PB: predicated region body
PF: predicated region fallthrough
CT: control target
= control target key end

     0   :  { %14 = vsyncpa [#allocation3], 0  ;;  %s875_s0 = inlined_call_operand.hbm [shape: bf16[8,32], index: 0, kind: input, shape index: {}]   ;;  %s876_s1 = inlined_call_operand.hbm [shape: bf16[32,64], index: 1, kind: input, shape index: {}]   ;;  %s877_s2 = inlined_call_operand.vmem [shape: f32[1,64], index: 2, kind: input, shape index: {}]   ;;  %s878_s3 = inlined_call_operand.vmem [shape: f32[1,64], index: 3, kind: input, shape index: {}]   ;;  %s879_s4 = inlined_call_operand.hbm [shape: bf16[64,128], index: 4, kind: input, shape index: {}]   ;;  %s880_s5 = inlined_call_operand.vmem [shape: f32[1,128], index: 5, kind: input, shape index: {}]   ;;  %s881_s6 = inlined_call_operand.vmem [shape: f32[1,128], index: 6, kind: input, shape index: {}]   ;;  %s882_s7 = inlined_call_operand.hbm [shape: bf16[128,256], index: 7, kind: input, shape index: {}]   ;;  %s883_s8 = inlined_call_operand.vmem [shape: f32[1,256], index: 8, kind: input, shape index: {}]   ;;  %s884_s9 = inlined_call_operand.hbm [shape: f32[8,256], index: 9, kind: output, shape index: {}]  }
   0x1   :  { %15 = vsyncpa [#allocation6], 0 }
   0x2   :  { %16 = vsyncpa [#allocation9], 0 }
   0x3   :  { %17 = vsyncpa [#allocation4], 0  ;;  %s718_s30 = smov [#allocation5]   ;;  %s600_s13 = scalar_lea.hbm %s876_s1, 256 }
   0x4   :  { %s33_s10 = sshll.u32 %s718_s30, 4  ;;  %p601_p0 = scmp.ne.s32.totalorder %s876_s1, %s600_s13  ;;  %s34_s10 = int_to_ptr.vmem [resolvable:$true] %s33_s10 }
   0x5   :  { %p604_p1 = scmp.lt.u32.totalorder %s600_s13, %s876_s1 }
   0x7   :  { %p606_p2 = pnand %p604_p1, %p601_p0 }
   0x9   :  { %609 = shalt.err (!%p606_p2)
}
   0xa   :  { %s610_s18 = scalar_lea.vmem %s34_s10, 256  ;;  %p615_p4 = scmp.lt.s32.totalorder %s34_s10, %s34_s10 }
   0xb   :  { %p611_p3 = scmp.ne.s32.totalorder %s34_s10, %s610_s18  ;;  %p616_p5 = scmp.lt.s32.totalorder %s610_s18, %s610_s18 }
   0xd   :  { %p617_p6 = por %p616_p5, %p615_p4 }
   0xf   :  { %p618_p7 = pnand %p617_p6, %p611_p3 }
  0x11   :  { %621 = shalt.err (!%p618_p7)
}
  0x12   :  { %s719_s19 = smov 64   ;;  %s720_s20 = smov 4  }
  0x13   :  { %39 = dma.hbm_to_vmem [thread:$0]  %s876_s1, 256, %s34_s10, [#allocation6], %s719_s19, %s719_s19, %s720_s20  }
  0x14   :  { %s721_s23 = smov [#allocation2]   ;;  %s722_s25 = smov [#allocation7]  }
  0x15   :  { %s24_s24 = sshll.u32 %s721_s23, 4  ;;  %s49_s26 = sshll.u32 %s722_s25, 4  ;;  %s25_s24 = int_to_ptr.vmem [resolvable:$true] %s24_s24  ;;  %s50_s26 = int_to_ptr.vmem [resolvable:$true] %s49_s26 }
  0x16   :  { %s622_s29 = scalar_lea.hbm %s875_s0, 64 }
  0x17   :  { %p623_p8 = scmp.ne.s32.totalorder %s875_s0, %s622_s29  ;;  %p626_p9 = scmp.lt.u32.totalorder %s622_s29, %s875_s0 }
  0x19   :  { %p628_p10 = pnand %p626_p9, %p623_p8 }
  0x1b   :  { %631 = shalt.err (!%p628_p10)
}
  0x1c   :  { %s632_s1 = scalar_lea.vmem %s25_s24, 64  ;;  %p637_p12 = scmp.lt.s32.totalorder %s25_s24, %s25_s24 }
  0x1d   :  { %p633_p11 = scmp.ne.s32.totalorder %s25_s24, %s632_s1  ;;  %p638_p13 = scmp.lt.s32.totalorder %s632_s1, %s632_s1 }
  0x1f   :  { %p639_p0 = por %p638_p13, %p637_p12 }
  0x21   :  { %p640_p1 = pnand %p639_p0, %p633_p11 }
  0x23   :  { %643 = shalt.err (!%p640_p1)
}
  0x24   :  { %27 = dma.hbm_to_vmem [thread:$0]  %s875_s0, 64, %s25_s24, [#allocation3]  }
  0x25   :  { %s644_s17 = scalar_lea.hbm %s879_s4, 512 }
  0x26   :  { %p645_p2 = scmp.ne.s32.totalorder %s879_s4, %s644_s17  ;;  %p648_p3 = scmp.lt.u32.totalorder %s644_s17, %s879_s4 }
  0x28   :  { %p650_p4 = pnand %p648_p3, %p645_p2 }
  0x2a   :  { %653 = shalt.err (!%p650_p4)
}
  0x2b   :  { %s654_s25 = scalar_lea.vmem %s50_s26, 512  ;;  %p659_p6 = scmp.lt.s32.totalorder %s50_s26, %s50_s26 }
  0x2c   :  { %p655_p5 = scmp.ne.s32.totalorder %s50_s26, %s654_s25  ;;  %p660_p7 = scmp.lt.s32.totalorder %s654_s25, %s654_s25 }
  0x2e   :  { %p661_p8 = por %p660_p7, %p659_p6 }
  0x30   :  { %p662_p9 = pnand %p661_p8, %p655_p5 }
  0x32   :  { %665 = shalt.err (!%p662_p9)
}
  0x33   :  { %55 = dma.hbm_to_vmem [thread:$0]  %s879_s4, 512, %s50_s26, [#allocation6], %s719_s19, %s719_s19, %s720_s20  }
  0x34   :  { %s723_s27 = smov [#allocation8]   ;;  %s666_s11 = scalar_lea.hbm %s882_s7, 2048 }
  0x35   :  { %s65_s28 = sshll.u32 %s723_s27, 4  ;;  %p667_p10 = scmp.ne.s32.totalorder %s882_s7, %s666_s11  ;;  %s66_s28 = int_to_ptr.vmem [resolvable:$true] %s65_s28 }
  0x36   :  { %p670_p11 = scmp.lt.u32.totalorder %s666_s11, %s882_s7 }
  0x38   :  { %p672_p12 = pnand %p670_p11, %p667_p10 }
  0x3a   :  { %675 = shalt.err (!%p672_p12)
}
  0x3b   :  { %s676_s14 = scalar_lea.vmem %s66_s28, 2048  ;;  %p681_p0 = scmp.lt.s32.totalorder %s66_s28, %s66_s28 }
  0x3c   :  { %p677_p13 = scmp.ne.s32.totalorder %s66_s28, %s676_s14  ;;  %p682_p1 = scmp.lt.s32.totalorder %s676_s14, %s676_s14 }
  0x3e   :  { %p683_p2 = por %p682_p1, %p681_p0 }
  0x40   :  { %p684_p3 = pnand %p683_p2, %p677_p13 }
  0x42   :  { %687 = shalt.err (!%p684_p3)
}
  0x43   :  { %s724_s4 = smov 128   ;;  %s725_s19 = smov 8  }
  0x44   :  { %71 = dma.hbm_to_vmem [thread:$0]  %s882_s7, 2048, %s66_s28, [#allocation9], %s724_s4, %s724_s4, %s725_s19  }
  0x45   :  { %710 = dma.done.wait [#allocation3], 64  }
  0x46   :  { %711 = vsyncadd [#allocation3], 4294967232 }
  0x47   :  { %712 = dma.done.wait [#allocation6], 768  }
  0x48   :  { %713 = vsyncadd [#allocation6], 4294966528 }
  0x49   :  { %714 = dma.done.wait [#allocation9], 2048  }
  0x4a   :  { %715 = vsyncadd [#allocation9], 4294965248  ;;  %v726_v0 = vmov 0.0   ;;  %vm727_vm0 = vmmov 0   ;;  %v558_v1 = vld [vmem:[#allocation5] sm:$0xff]   ;;  %v559_v2 = vld [vmem:[#allocation5 + $0x8] sm:$0xff]   ;;  %v177_v33 = vlaneseq }
  0x4b   :  { %526 = vmatprep.subr.bf16.mxu1 %v726_v0  ;;  %530 = vmatprep.mubr.msk.bf16.mxu1 %vm727_vm0, %v726_v0  ;;  %v87_v3 = vld [vmem:[#allocation2] sm:$0xf]  ;;  %vm104_vm1 = vcmask 261120   ;;  %v560_v4 = vld [vmem:[#allocation7] sm:$0xff]   ;;  %v562_v6 = vld [vmem:[#allocation7 + $0x10] sm:$0xff]   ;;  %vm150_vm2 = vcmask 523264  }
  0x4c   :  { %527 = vmatpush3.bf16.msra.mxu1 %v558_v1  ;;  %v561_v5 = vld [vmem:[#allocation7 + $0x8] sm:$0xff]   ;;  %v563_v7 = vld [vmem:[#allocation7 + $0x18] sm:$0xff]   ;;  %v836_v34 = vshrl.u32 %v177_v33, 7  ;;  %v728_v63 = vmov 0  }
  0x4d   :  { %528 = vmatprep.subr.bf16.mxu1 %v726_v0  ;;  %v148_v35 = vld [vmem:[%s877_s2] sm:$0x1]  ;;  %v566_v49 = vld [vmem:[#allocation8] ss:$8 sps:$4 sm:$0xff]   ;;  %v567_v50 = vld [vmem:[#allocation8 + $0x14] ss:$8 sps:$4 sm:$0xff]   ;;  %448 = vmatprep.mubr.bf16.mxu0 %v728_v63 }
  0x4e   :  { %v842_v36 = vsub.s32 0, %v836_v34  ;;  %v149_v39 = vld [vmem:[%s878_s3] sm:$0x1]  ;;  %v569_v51 = vld [vmem:[#allocation8 + $0x10] ss:$8 sps:$4 sm:$0xff]  }
  0x4f   :  { %v564_v48 = vld [vmem:[#allocation8 + $0x4] ss:$8 sps:$4 sm:$0xff]   ;;  %v572_v53 = vld [vmem:[#allocation8 + $0x20] ss:$8 sps:$4 sm:$0xff]   ;;  %v573_v54 = vld [vmem:[#allocation8 + $0x34] ss:$8 sps:$4 sm:$0xff]  }
  0x50   :  { %529 = vmatpush3.bf16.msra.mxu1 %v559_v2  ;;  %416 = vmatprep.subr.bf16.mxu0 %v564_v48  ;;  %v570_v52 = vld [vmem:[#allocation8 + $0x24] ss:$8 sps:$4 sm:$0xff]   ;;  %v575_v55 = vld [vmem:[#allocation8 + $0x30] ss:$8 sps:$4 sm:$0xff]   ;;  %v578_v57 = vld [vmem:[#allocation8 + $0x40] ss:$8 sps:$4 sm:$0xff]  }
  0x51   :  { %534 = vmatprep.subr.bf16.mxu1 %v726_v0  ;;  %417 = vmatpush1.bf16.msra.mxu0 %v566_v49  ;;  %v576_v56 = vld [vmem:[#allocation8 + $0x44] ss:$8 sps:$4 sm:$0xff]   ;;  %v579_v58 = vld [vmem:[#allocation8 + $0x54] ss:$8 sps:$4 sm:$0xff]   ;;  %v581_v59 = vld [vmem:[#allocation8 + $0x50] ss:$8 sps:$4 sm:$0xff]  }
  0x52   :  { %418 = vmatprep.subr.bf16.mxu0 %v567_v50  ;;  %v582_v60 = vld [vmem:[#allocation8 + $0x64] ss:$8 sps:$4 sm:$0xff]   ;;  %v584_v61 = vld [vmem:[#allocation8 + $0x60] ss:$8 sps:$4 sm:$0xff]   ;;  %v585_v62 = vld [vmem:[#allocation8 + $0x74] ss:$8 sps:$4 sm:$0xff]  }
  0x53   :  { %531 = vmatmul.mubr.msk.bf16.vlgmr.msra.gmra.mrb[0].mxu1 %vm104_vm1, %v87_v3 }
  0x54   :  { %542 = vmatprep.mubr.msk.bf16.mxu1 %vm727_vm0, %v726_v0  ;;  %535 = vmatpush3.bf16.msra.mxu1 %v560_v4 }
  0x55   :  { %536 = vmatprep.subr.bf16.mxu1 %v726_v0  ;;  %419 = vmatpush1.bf16.msra.mxu0 %v569_v51 }
  0x56   :  { %420 = vmatprep.subr.bf16.mxu0 %v570_v52 }
  0x58   :  { %537 = vmatpush3.bf16.msra.mxu1 %v561_v5 }
  0x59   :  { %538 = vmatprep.subr.bf16.mxu1 %v726_v0  ;;  %421 = vmatpush1.bf16.msra.mxu0 %v572_v53 }
  0x5a   :  { %422 = vmatprep.subr.bf16.mxu0 %v573_v54 }
  0x5c   :  { %539 = vmatpush3.bf16.msra.mxu1 %v562_v6 }
  0x5d   :  { %540 = vmatprep.subr.bf16.mxu1 %v726_v0  ;;  %423 = vmatpush1.bf16.msra.mxu0 %v575_v55  ;;  %v587_v0 = vld [vmem:[#allocation8 + $0x70] ss:$8 sps:$4 sm:$0xff]  }
  0x5e   :  { %424 = vmatprep.subr.bf16.mxu0 %v576_v56 }
  0x60   :  { %541 = vmatpush3.bf16.msra.mxu1 %v563_v7 }
  0x61   :  { %425 = vmatpush1.bf16.msra.mxu0 %v578_v57 }
  0x62   :  { %426 = vmatprep.subr.bf16.mxu0 %v579_v58 }
  0x65   :  { %427 = vmatpush1.bf16.msra.mxu0 %v581_v59 }
  0x66   :  { %428 = vmatprep.subr.bf16.mxu0 %v582_v60 }
  0x69   :  { %429 = vmatpush1.bf16.msra.mxu0 %v584_v61 }
  0x6a   :  { %430 = vmatprep.subr.bf16.mxu0 %v585_v62 }
  0x6d   :  { %431 = vmatpush1.bf16.msra.mxu0 %v587_v0 }
 0x126   :  { %v142_v8 = vpop.f32.mrb[0].mxu1 }
 0x127   :  { %v151_v9 = vsel %vm150_vm2, %v142_v8, 0.0  ;;  %v159_v10 = vmul.f32 %v142_v8, %v142_v8  ;;  %v532_v11 = vpop.f32.mrb[1].mxu1 }
 0x128   :  { %v152_v12 = vrot.slane %v151_v9, 4  ;;  %v145_v13 = vpop.f32.mrb[2].mxu1 }
 0x129   :  { %v160_v14 = vsel %vm150_vm2, %v159_v10, 0.0  ;;  %v533_v15 = vpop.f32.mrb[3].mxu1 }
 0x12a   :  { %v153_v16 = vadd.f32 %v152_v12, %v151_v9  ;;  %v161_v17 = vrot.slane %v160_v14, 4 }
 0x12c   :  { %v154_v18 = vrot.slane %v153_v16, 2  ;;  %v162_v19 = vadd.f32 %v161_v17, %v160_v14 }
 0x12e   :  { %v155_v20 = vadd.f32 %v154_v18, %v153_v16  ;;  %v163_v21 = vrot.slane %v162_v19, 2 }
 0x130   :  { %v156_v22 = vrot.slane %v155_v20, 1  ;;  %v164_v23 = vadd.f32 %v163_v21, %v162_v19 }
 0x132   :  { %v157_v24 = vadd.f32 %v156_v22, %v155_v20  ;;  %v165_v25 = vrot.slane %v164_v23, 1 }
 0x134   :  { %v158_v26 = vmul.f32 0.125, %v157_v24  ;;  %v166_v27 = vadd.f32 %v165_v25, %v164_v23  ;;  %v267_v24 = vld [vmem:[%s880_s5] sm:$0x1]  ;;  %s729_s5 = smov [#allocation10]  }
 0x136   :  { %v167_v28 = vmul.f32 0.125, %v166_v27  ;;  %v168_v29 = vmul.f32 %v158_v26, %v158_v26  ;;  %v268_v27 = vld [vmem:[%s881_s6] sm:$0x1]  ;;  %s483_s6 = sshll.u32 %s729_s5, 4  ;;  %s484_s6 = int_to_ptr.vmem [resolvable:$true] %s483_s6 }
 0x137   :  { %p693_p5 = scmp.lt.s32.totalorder %s484_s6, %s484_s6 }
 0x138   :  { %v169_v30 = vsub.f32 %v167_v28, %v168_v29 }
 0x13a   :  { %v170_v31 = vmax.f32 %v169_v30, 0.0 }
 0x13c   :  { %v171_v32 = vadd.f32 1e-05, %v170_v31 }
 0x13e   :  { %588 = vrsqrt.f32 %v171_v32 }
 0x148   :  { %v589_v37 = vpop.eup %588 }
 0x149   :  { %v173_v38 = vmul.f32 %v589_v37, %v148_v35 }
 0x14b   :  { %v174_v40 = vmul.f32 %v173_v38, %v158_v26  ;;  %v180_v41 = vrot.slane %v173_v38, %v842_v36  ;;  %v324_v38 = vld [vmem:[%s883_s8] sm:$0x3]  ;;  %s688_s8 = scalar_lea.vmem %s484_s6, 256 }
 0x14c   :  { %p689_p4 = scmp.ne.s32.totalorder %s484_s6, %s688_s8  ;;  %p694_p6 = scmp.lt.s32.totalorder %s688_s8, %s688_s8 }
 0x14d   :  { %v175_v42 = vsub.f32 %v149_v39, %v174_v40  ;;  %v182_v43 = vmul.f32 %v180_v41, %v142_v8  ;;  %v332_v39 = vsub.s32 1, %v836_v34  ;;  %v329_v40 = vrot.slane %v324_v38, %v842_v36 }
 0x14e   :  { %p695_p7 = por %p694_p6, %p693_p5 }
 0x14f   :  { %v187_v44 = vrot.slane %v175_v42, %v842_v36  ;;  %v333_v41 = vrot.slane %v324_v38, %v332_v39 }
 0x150   :  { %p696_p8 = pnand %p695_p7, %p689_p4 }
 0x151   :  { %v189_v45 = vadd.f32 %v187_v44, %v182_v43 }
 0x153   :  { %v190_v46 = vmax.f32 %v189_v45, 0.0 }
 0x155   :  { %v191_v47 = vpack.c.bf16 %v190_v46, %v190_v46 }
 0x157   :  { %543 = vmatmul.mubr.msk.bf16.vlgmr.msra.gmra.mrb[4].mxu1 %vm150_vm2, %v191_v47 }
 0x22a   :  { %v261_v1 = vpop.f32.mrb[4].mxu1 }
 0x22b   :  { %v269_v2 = vrot.slane %v261_v1, 4  ;;  %v276_v3 = vmul.f32 %v261_v1, %v261_v1  ;;  %v544_v4 = vpop.f32.mrb[5].mxu1 }
 0x22c   :  { %v264_v5 = vpop.f32.mrb[6].mxu1 }
 0x22d   :  { %v270_v6 = vadd.f32 %v269_v2, %v261_v1  ;;  %v277_v7 = vrot.slane %v276_v3, 4  ;;  %v545_v8 = vpop.f32.mrb[7].mxu1 }
 0x22f   :  { %v271_v9 = vrot.slane %v270_v6, 2  ;;  %v278_v10 = vadd.f32 %v277_v7, %v276_v3 }
 0x231   :  { %v272_v11 = vadd.f32 %v271_v9, %v270_v6  ;;  %v279_v12 = vrot.slane %v278_v10, 2 }
 0x233   :  { %v273_v13 = vrot.slane %v272_v11, 1  ;;  %v280_v14 = vadd.f32 %v279_v12, %v278_v10 }
 0x235   :  { %v274_v15 = vadd.f32 %v273_v13, %v272_v11  ;;  %v281_v16 = vrot.slane %v280_v14, 1 }
 0x237   :  { %v275_v17 = vmul.f32 0.125, %v274_v15  ;;  %v282_v18 = vadd.f32 %v281_v16, %v280_v14 }
 0x239   :  { %v283_v19 = vmul.f32 0.125, %v282_v18  ;;  %v284_v20 = vmul.f32 %v275_v17, %v275_v17 }
 0x23b   :  { %v285_v21 = vsub.f32 %v283_v19, %v284_v20 }
 0x23d   :  { %v286_v22 = vmax.f32 %v285_v21, 0.0 }
 0x23f   :  { %v287_v23 = vadd.f32 1e-05, %v286_v22 }
 0x241   :  { %590 = vrsqrt.f32 %v287_v23 }
 0x24b   :  { %v591_v25 = vpop.eup %590 }
 0x24c   :  { %v289_v26 = vmul.f32 %v591_v25, %v267_v24 }
 0x24e   :  { %v296_v28 = vrot.slane %v289_v26, %v842_v36  ;;  %v290_v29 = vmul.f32 %v289_v26, %v275_v17 }
 0x250   :  { %v291_v30 = vsub.f32 %v268_v27, %v290_v29  ;;  %v298_v31 = vmul.f32 %v296_v28, %v261_v1 }
 0x252   :  { %v303_v32 = vrot.slane %v291_v30, %v842_v36 }
 0x254   :  { %v305_v33 = vadd.f32 %v303_v32, %v298_v31 }
 0x256   :  { %v306_v35 = vmax.f32 %v305_v33, 0.0 }
 0x258   :  { %v307_v37 = vpack.c.bf16 %v306_v35, %v306_v35 }
 0x25a   :  { %449 = vmatmul.mubr.bf16.vlgmr.msra.gmra.mrb[0].mxu0 %v307_v37 }
 0x32d   :  { %v450_v42 = vpop.f32.mrb[0].mxu0 }
 0x32e   :  { %v451_v43 = vadd.f32 %v450_v42, %v329_v40  ;;  %v452_v44 = vpop.f32.mrb[1].mxu0 }
 0x32f   :  { %v453_v45 = vadd.f32 %v452_v44, %v333_v41  ;;  %v454_v46 = vpop.f32.mrb[2].mxu0 }
 0x330   :  { %v457_v47 = vand.u32 2147483647, %v451_v43  ;;  %v455_v48 = vpop.f32.mrb[3].mxu0  ;;  %vm465_vm3 = vcmp.ge.f32.partialorder %v451_v43, 0.0 }
 0x331   :  { %v458_v49 = vand.u32 2147483647, %v453_v45  ;;  %vm466_vm4 = vcmp.ge.f32.partialorder %v453_v45, 0.0 }
 0x332   :  { %v459_v50 = vsub.f32 0.0, %v457_v47 }
 0x333   :  { %v460_v51 = vsub.f32 0.0, %v458_v49 }
 0x334   :  { %v461_v52 = vmul.f32 1.442695, %v459_v50 }
 0x335   :  { %v463_v53 = vmul.f32 1.442695, %v460_v51 }
 0x336   :  { %592 = vpow2.f32 %v461_v52 }
 0x337   :  { %594 = vpow2.f32 %v463_v53 }
 0x340   :  { %v593_v54 = vpop.eup %592 }
 0x341   :  { %v595_v55 = vpop.eup %594  ;;  %v469_v34 = vadd.f32 1.0, %v593_v54  ;;  %v467_v57 = vsel %vm465_vm3, 1.0, %v593_v54 }
 0x342   :  { %v470_v56 = vadd.f32 1.0, %v595_v55  ;;  %v468_v60 = vsel %vm466_vm4, 1.0, %v595_v55 }
 0x343   :  { %596 = vrcp.f32 %v469_v34 }
 0x344   :  { %598 = vrcp.f32 %v470_v56 }
 0x34d   :  { %v597_v36 = vpop.eup %596 }
 0x34e   :  { %v599_v58 = vpop.eup %598  ;;  %v472_v59 = vmul.f32 %v597_v36, %v467_v57 }
 0x34f   :  { %v474_v61 = vmul.f32 %v599_v58, %v468_v60 }
 0x350   :  { %475 = vst [vmem:[#allocation10] sm:$0xff] %v472_v59 }
 0x351   :  { %476 = vst [vmem:[#allocation10 + $0x8] sm:$0xff] %v474_v61 }
 0x352   :  { %699 = shalt.err (!%p696_p8)
}
 0x353   :  { %s700_s24 = scalar_lea.hbm %s884_s9, 256 }
 0x354   :  { %p701_p9 = scmp.ne.s32.totalorder %s884_s9, %s700_s24  ;;  %p704_p10 = scmp.lt.u32.totalorder %s700_s24, %s884_s9 }
 0x356   :  { %p706_p11 = pnand %p704_p10, %p701_p9 }
 0x358   :  { %709 = shalt.err (!%p706_p11)
}
 0x359   :  { %486 = dma.vmem_to_hbm [thread:$0]  %s484_s6, 256, %s884_s9, [#allocation4]  }
 0x35a   :  { %716 = dma.done.wait [#allocation4], 256  }
 0x35b   :  { %717 = vsyncadd [#allocation4], 4294967040 }
 0x35c   :  { %490 = vsyncpa [#allocation3], 1 }
 0x35d   :  { %491 = vsyncpa [#allocation6], 1 }
 0x35e   :  { %492 = vsyncpa [#allocation9], 1 }
 0x35f   :  { %493 = vsyncpa [#allocation4], 1 }

</bundles_post_ra>
